<compile_context>
chip_gen: v5e
topology: v5e:2x2
jax: 0.10.0
libtpu: 0.0.40
codegen_flags: <defaults>
</compile_context>

<pallas_src>
import functools

import jax
import jax.numpy as jnp
from jax import lax
from jax.experimental import pallas as pl
from jax.experimental.pallas import tpu as pltpu


def _round_up(v, m):
    return ((v + m - 1) // m) * m


# ----------------------------- Kernel 1: stats -------------------------------

def stats_kernel(x_ref, mean_ref, cov_ref, sum_acc, xtx_acc, *, n_actual):
    """Accumulate sum(x) and X^T X over row tiles; finalize mean & covariance.

    x_ref:    (TM, D) row tile of the (zero-padded) input
    mean_ref: (1, D)  output column mean
    cov_ref:  (D, D)  output covariance = (1/N) Xc^T Xc
    sum_acc:  (1, D)  VMEM scratch accumulator
    xtx_acc:  (D, D)  VMEM scratch accumulator (f32)
    """
    i = pl.program_id(0)

    @pl.when(i == 0)
    def _():
        sum_acc[...] = jnp.zeros_like(sum_acc)
        xtx_acc[...] = jnp.zeros_like(xtx_acc)

    x = x_ref[...]
    sum_acc[...] += jnp.sum(x, axis=0, keepdims=True)
    # X^T X without an explicit transpose: contract over rows (axis 0).
    xtx_acc[...] += lax.dot_general(
        x, x,
        dimension_numbers=(((0,), (0,)), ((), ())),
        preferred_element_type=jnp.float32,
    )

    @pl.when(i == pl.num_programs(0) - 1)
    def _():
        inv_n = jnp.float32(1.0 / n_actual)
        mean = sum_acc[...] * inv_n                     # (1, D)
        mean_ref[...] = mean
        # TODO(synk): one-pass covariance (E[xx^T] - mean mean^T); slightly less
        # numerically stable than centering first when |mean| >> stddev.
        outer = lax.dot_general(                        # mean^T mean -> (D, D)
            mean, mean,
            dimension_numbers=(((0,), (0,)), ((), ())),
            preferred_element_type=jnp.float32,
        )
        cov_ref[...] = xtx_acc[...] * inv_n - outer


# --------------------------- Kernel 2: projection -----------------------------

def proj_kernel(x_ref, mean_ref, p_ref, o_ref):
    """(x - mean) @ P for one row tile; P is lane-padded to a multiple of 128."""
    xc = x_ref[...] - mean_ref[...]
    o_ref[...] = jnp.dot(xc, p_ref[...], preferred_element_type=jnp.float32)


# ------------------------------- Wrapper ---------------------------------------

def pca_forward(x, n_components=2, row_tile=512):
    """Replicates PCA.forward from lfmda/viz.py."""
    x = x.astype(jnp.float32)
    n, d = x.shape

    # Row tile: multiple of 8, capped so 2 double-buffered input tiles stay
    # well under scoped VMEM even on v7x (64 MiB physical per TC).
    tm_cap = max(8, ((24 << 20) // (2 * d * 4)) // 8 * 8)
    tm = min(_round_up(n, 8), _round_up(row_tile, 8), tm_cap)
    n_pad = _round_up(n, tm)
    if n_pad != n:
        # Zero rows contribute nothing to sum(x) or X^T X (we divide by the
        # true n), so padding is exact for the stats kernel.
        x = jnp.pad(x, ((0, n_pad - n), (0, 0)))
    n_tiles = n_pad // tm

    # --- Kernel 1: mean + covariance (tiled reduction over N) -----------------
    stats_vmem = 2 * tm * d * 4 + 3 * (d * d + d) * 4
    mean_, cov = pl.pallas_call(
        functools.partial(stats_kernel, n_actual=n),
        grid=(n_tiles,),
        in_specs=[pl.BlockSpec((tm, d), lambda i: (i, 0))],
        out_specs=(
            pl.BlockSpec((1, d), lambda i: (0, 0)),
            pl.BlockSpec((d, d), lambda i: (0, 0)),
        ),
        out_shape=(
            jax.ShapeDtypeStruct((1, d), jnp.float32),
            jax.ShapeDtypeStruct((d, d), jnp.float32),
        ),
        scratch_shapes=[
            pltpu.VMEM((1, d), jnp.float32),
            pltpu.VMEM((d, d), jnp.float32),
        ],
        compiler_params=pltpu.CompilerParams(
            dimension_semantics=("arbitrary",),
            vmem_limit_bytes=min(max(stats_vmem + (4 << 20), 16 << 20), 64 << 20),
        ),
        cost_estimate=pl.CostEstimate(
            flops=2 * n_pad * d * d + n_pad * d,
            transcendentals=0,
            bytes_accessed=n_pad * d * 4 + (d * d + d) * 4,
        ),
    )(x)

    # --- Glue: eigendecomposition ---------------------------------------------
    # TODO(synk): eigendecomposition has no Pallas/Mosaic primitive; cov is
    # symmetric so torch.eig's (re, im) norms reduce to |lambda|.
    eigenvalues, eigenvectors = jnp.linalg.eigh(cov)
    magnitudes = jnp.abs(eigenvalues)
    idx = jnp.argsort(-magnitudes)                 # descending by magnitude
    eigenvectors = eigenvectors[:, idx]
    proj_mat = eigenvectors[:, :n_components]      # (D, n_components)

    # Lane-dense projection output: pad component dim to a multiple of 128.
    nc_pad = _round_up(max(n_components, 1), 128)
    proj_pad = jnp.zeros((d, nc_pad), jnp.float32).at[:, :n_components].set(proj_mat)

    # --- Kernel 2: (x - mean) @ P (tiled over N, parallel across cores) -------
    proj_vmem = 2 * (tm * d * 4 + tm * nc_pad * 4) + 2 * (d * nc_pad + d) * 4
    out = pl.pallas_call(
        proj_kernel,
        grid=(n_tiles,),
        in_specs=[
            pl.BlockSpec((tm, d), lambda i: (i, 0)),
            pl.BlockSpec((1, d), lambda i: (0, 0)),
            pl.BlockSpec((d, nc_pad), lambda i: (0, 0)),
        ],
        out_specs=pl.BlockSpec((tm, nc_pad), lambda i: (i, 0)),
        out_shape=jax.ShapeDtypeStruct((n_pad, nc_pad), jnp.float32),
        compiler_params=pltpu.CompilerParams(
            dimension_semantics=("parallel",),
            vmem_limit_bytes=min(max(proj_vmem + (4 << 20), 16 << 20), 64 << 20),
        ),
        cost_estimate=pl.CostEstimate(
            flops=2 * n_pad * d * nc_pad,
            transcendentals=0,
            bytes_accessed=n_pad * d * 4 + d * nc_pad * 4 + n_pad * nc_pad * 4,
        ),
    )(x, mean_, proj_pad)

    return out[:n, :n_components]


# ----------------------------- Reference (pure JAX) ----------------------------

def pca_reference(x, n_components=2):
    x = x.astype(jnp.float32)
    n = x.shape[0]
    mean = jnp.mean(x, axis=0)
    xc = x - mean
    cov = (1.0 / n) * (xc.T @ xc)
    w, v = jnp.linalg.eigh(cov)
    idx = jnp.argsort(-jnp.abs(w))
    v = v[:, idx]
    return xc @ v[:, :n_components]


# --------------------------------- Main ----------------------------------------

if __name__ == "__main__":
    key = jax.random.PRNGKey(0)
    N, D, NC = 64, 16, 2               # small shapes: 64 samples, 16 features
    x = jax.random.normal(key, (N, D), dtype=jnp.float32)

    out = pca_forward(x, n_components=NC)
    out = jax.block_until_ready(out)
    assert out.shape == (N, NC) and out.dtype == jnp.float32

    ref = jax.block_until_ready(pca_reference(x, n_components=NC))

    # Eigenvector signs are ambiguous; compare up to per-column sign.
    import numpy as np
    o = np.asarray(out)
    r = np.asarray(ref)
    for c in range(NC):
        err_pos = np.max(np.abs(o[:, c] - r[:, c]))
        err_neg = np.max(np.abs(o[:, c] + r[:, c]))
        assert min(err_pos, err_neg) < 1e-3, (c, err_pos, err_neg)

    print("KERNEL_OK")
</pallas_src>

<mosaic_0001>
module attributes {stable_mosaic.version = 11 : i64} {
  func.func @stats_kernel(%arg0: i32, %arg1: memref<64x16xf32, #tpu.memory_space<vmem>>, %arg2: memref<1x16xf32, #tpu.memory_space<vmem>>, %arg3: memref<16x16xf32, #tpu.memory_space<vmem>>, %arg4: memref<1x16xf32, #tpu.memory_space<vmem>>, %arg5: memref<16x16xf32, #tpu.memory_space<vmem>>) attributes {dimension_semantics = [#tpu.dimension_semantics<arbitrary>], iteration_bounds = array<i64: 1>, scalar_prefetch = 0 : i64, scratch_operands = 2 : i64, tpu.core_type = #tpu.core_type<tc>, window_params = [{transform_indices = @transform_0, window_bounds = array<i64: 64, 16>}, {pipeline_mode = #tpu.pipeline_mode<synchronous>, transform_indices = @transform_1, window_bounds = array<i64: 1, 16>}, {pipeline_mode = #tpu.pipeline_mode<synchronous>, transform_indices = @transform_2, window_bounds = array<i64: 16, 16>}]} {
    %c0_i32 = arith.constant 0 : i32
    %0 = arith.cmpi eq, %arg0, %c0_i32 : i32
    %1 = arith.extui %0 : i1 to i32
    %c0_i32_0 = arith.constant 0 : i32
    %2 = arith.cmpi ne, %1, %c0_i32_0 : i32
    scf.if %2 {
      %cst_13 = arith.constant 0.000000e+00 : f32
      %16 = vector.broadcast %cst_13 : f32 to vector<1x16xf32>
      %c0_14 = arith.constant 0 : index
      %c0_15 = arith.constant 0 : index
      %17 = vector.load %arg4[%c0_14, %c0_15] : memref<1x16xf32, #tpu.memory_space<vmem>>, vector<1x16xf32>
      tpu.vector_store %arg4[%c0_14, %c0_15], %16 {strides = array<i32>} : memref<1x16xf32, #tpu.memory_space<vmem>>, vector<1x16xf32>,
      %cst_16 = arith.constant 0.000000e+00 : f32
      %18 = vector.broadcast %cst_16 : f32 to vector<16x16xf32>
      %c0_17 = arith.constant 0 : index
      %c0_18 = arith.constant 0 : index
      %19 = vector.load %arg5[%c0_17, %c0_18] : memref<16x16xf32, #tpu.memory_space<vmem>>, vector<16x16xf32>
      tpu.vector_store %arg5[%c0_17, %c0_18], %18 {strides = array<i32>} : memref<16x16xf32, #tpu.memory_space<vmem>>, vector<16x16xf32>,
    } else {
    }
    %c0 = arith.constant 0 : index
    %c0_1 = arith.constant 0 : index
    %3 = vector.load %arg1[%c0, %c0_1] : memref<64x16xf32, #tpu.memory_space<vmem>>, vector<64x16xf32>
    %c0_2 = arith.constant 0 : index
    %c0_3 = arith.constant 0 : index
    %4 = vector.load %arg4[%c0_2, %c0_3] : memref<1x16xf32, #tpu.memory_space<vmem>>, vector<1x16xf32>
    %cst = arith.constant dense<0.000000e+00> : vector<16xf32>
    %5 = vector.multi_reduction <add>, %3, %cst [0] : vector<64x16xf32> to vector<16xf32>
    %6 = vector.shape_cast %5 : vector<16xf32> to vector<1x16xf32>
    %7 = arith.addf %4, %6 : vector<1x16xf32>
    %c0_4 = arith.constant 0 : index
    %c0_5 = arith.constant 0 : index
    %8 = vector.load %arg4[%c0_4, %c0_5] : memref<1x16xf32, #tpu.memory_space<vmem>>, vector<1x16xf32>
    tpu.vector_store %arg4[%c0_4, %c0_5], %7 {strides = array<i32>} : memref<1x16xf32, #tpu.memory_space<vmem>>, vector<1x16xf32>,
    %c0_6 = arith.constant 0 : index
    %c0_7 = arith.constant 0 : index
    %9 = vector.load %arg5[%c0_6, %c0_7] : memref<16x16xf32, #tpu.memory_space<vmem>>, vector<16x16xf32>
    %cst_8 = arith.constant dense<0.000000e+00> : vector<16x16xf32>
    %10 = tpu.matmul %3, %3, %cst_8 {dimension_numbers = #tpu.dot_dimension_numbers<[0], [0], [1], [1], [0, 1, 1, 1], [], []>} : vector<64x16xf32>, vector<64x16xf32>, vector<16x16xf32> -> vector<16x16xf32>
    %11 = arith.addf %9, %10 : vector<16x16xf32>
    %c0_9 = arith.constant 0 : index
    %c0_10 = arith.constant 0 : index
    %12 = vector.load %arg5[%c0_9, %c0_10] : memref<16x16xf32, #tpu.memory_space<vmem>>, vector<16x16xf32>
    tpu.vector_store %arg5[%c0_9, %c0_10], %11 {strides = array<i32>} : memref<16x16xf32, #tpu.memory_space<vmem>>, vector<16x16xf32>,
    %c0_i32_11 = arith.constant 0 : i32
    %13 = arith.cmpi eq, %arg0, %c0_i32_11 : i32
    %14 = arith.extui %13 : i1 to i32
    %c0_i32_12 = arith.constant 0 : i32
    %15 = arith.cmpi ne, %14, %c0_i32_12 : i32
    scf.if %15 {
      %c0_13 = arith.constant 0 : index
      %c0_14 = arith.constant 0 : index
      %16 = vector.load %arg4[%c0_13, %c0_14] : memref<1x16xf32, #tpu.memory_space<vmem>>, vector<1x16xf32>
      %cst_15 = arith.constant 1.562500e-02 : f32
      %17 = vector.broadcast %cst_15 : f32 to vector<1x16xf32>
      %18 = arith.mulf %16, %17 : vector<1x16xf32>
      %c0_16 = arith.constant 0 : index
      %c0_17 = arith.constant 0 : index
      %19 = vector.load %arg2[%c0_16, %c0_17] : memref<1x16xf32, #tpu.memory_space<vmem>>, vector<1x16xf32>
      tpu.vector_store %arg2[%c0_16, %c0_17], %18 {strides = array<i32>} : memref<1x16xf32, #tpu.memory_space<vmem>>, vector<1x16xf32>,
      %cst_18 = arith.constant dense<0.000000e+00> : vector<16x16xf32>
      %20 = tpu.matmul %18, %18, %cst_18 {dimension_numbers = #tpu.dot_dimension_numbers<[0], [0], [1], [1], [0, 1, 1, 1], [], []>} : vector<1x16xf32>, vector<1x16xf32>, vector<16x16xf32> -> vector<16x16xf32>
      %c0_19 = arith.constant 0 : index
      %c0_20 = arith.constant 0 : index
      %21 = vector.load %arg5[%c0_19, %c0_20] : memref<16x16xf32, #tpu.memory_space<vmem>>, vector<16x16xf32>
      %cst_21 = arith.constant 1.562500e-02 : f32
      %22 = vector.broadcast %cst_21 : f32 to vector<16x16xf32>
      %23 = arith.mulf %21, %22 : vector<16x16xf32>
      %24 = arith.subf %23, %20 : vector<16x16xf32>
      %c0_22 = arith.constant 0 : index
      %c0_23 = arith.constant 0 : index
      %25 = vector.load %arg3[%c0_22, %c0_23] : memref<16x16xf32, #tpu.memory_space<vmem>>, vector<16x16xf32>
      tpu.vector_store %arg3[%c0_22, %c0_23], %24 {strides = array<i32>} : memref<16x16xf32, #tpu.memory_space<vmem>>, vector<16x16xf32>,
    } else {
    }
    return
  }
  func.func @transform_0(%arg0: i32) -> (i32, i32) {
    %c0_i32 = arith.constant 0 : i32
    %c0_i32_0 = arith.constant 0 : i32
    return %arg0, %c0_i32 : i32, i32
  }
  func.func @transform_1(%arg0: i32) -> (i32, i32) {
    %c0_i32 = arith.constant 0 : i32
    %c0_i32_0 = arith.constant 0 : i32
    %c0_i32_1 = arith.constant 0 : i32
    return %c0_i32, %c0_i32_0 : i32, i32
  }
  func.func @transform_2(%arg0: i32) -> (i32, i32) {
    %c0_i32 = arith.constant 0 : i32
    %c0_i32_0 = arith.constant 0 : i32
    %c0_i32_1 = arith.constant 0 : i32
    return %c0_i32, %c0_i32_0 : i32, i32
  }
}

</mosaic_0001>

<bundles_post_ra>
// kernel: tpu_custom_call.1
= control target key start
LH: loop header
LB: loop body
LE: loop exit
PB: predicated region body
PF: predicated region fallthrough
CT: control target
= control target key end

     0   :  { %8 = vsyncpa [#allocation5], 0  ;;  %vm18_vm0 = vcmask 130048   ;;  %vm16_vm1 = vcmask 122880   ;;  %v307_v9 = vmov 0.0   ;;  %s374_s0 = inlined_call_operand.vmem [shape: f32[64,16], index: 0, kind: input, shape index: {}]   ;;  %s375_s1 = inlined_call_operand.hbm [shape: f32[1,16], index: 1, kind: output, shape index: {0}]   ;;  %s376_s2 = inlined_call_operand.hbm [shape: f32[16,16], index: 2, kind: output, shape index: {1}]  }
   0x1   :  { %v21_v0 = vld [vmem:[%s374_s0] sm:$0xff]  ;;  %v22_v1 = vld [vmem:[%s374_s0 + $0x8] sm:$0xff]  ;;  %v23_v2 = vld [vmem:[%s374_s0 + $0x10] sm:$0xff]  ;;  %17 = vst.msk [vmem:[#allocation2] sm:$0x1] %vm16_vm1, %v307_v9 }
   0x2   :  { %57 = vxpose.xlu0.b32.start [1/8] (short) (narrow) %v21_v0, 16  ;;  %v31_v3 = vsel %vm18_vm0, %v21_v0, 0.0  ;;  %v32_v4 = vsel %vm18_vm0, %v22_v1, 0.0  ;;  %v24_v5 = vld [vmem:[%s374_s0 + $0x18] sm:$0xff]  ;;  %v25_v7 = vld [vmem:[%s374_s0 + $0x20] sm:$0xff]  ;;  %v34_v10 = vsel %vm18_vm0, %v23_v2, 0.0 }
   0x3   :  { %v33_v6 = vadd.f32 %v32_v4, %v31_v3  ;;  %v28_v8 = vld [vmem:[%s374_s0 + $0x38] sm:$0xff]  ;;  %v36_v11 = vsel %vm18_vm0, %v24_v5, 0.0  ;;  %19 = vst.msk [vmem:[#allocation3] sm:$0xff] %vm18_vm0, %v307_v9  ;;  %v26_v12 = vld [vmem:[%s374_s0 + $0x28] sm:$0xff]  ;;  %v27_v13 = vld [vmem:[%s374_s0 + $0x30] sm:$0xff] }
   0x4   :  { %104 = vmatpush.msra.mxu0 %v28_v8  ;;  %242 = vmatpush.msra.mxu2 %v28_v8  ;;  %20 = vst.msk [vmem:[#allocation3 + $0x8] sm:$0xff] %vm18_vm0, %v307_v9 }
   0x5   :  { %v35_v14 = vadd.f32 %v34_v10, %v33_v6 }
   0x6   :  { %9 = vsyncpa [#allocation7], 0  ;;  %v38_v15 = vsel %vm18_vm0, %v25_v7, 0.0  ;;  %105 = vmatpush.msra.mxu0 %v27_v13  ;;  %243 = vmatpush.msra.mxu2 %v27_v13  ;;  %v40_v17 = vsel %vm18_vm0, %v26_v12, 0.0  ;;  %v42_v19 = vsel %vm18_vm0, %v27_v13, 0.0  ;;  %v44_v21 = vsel %vm18_vm0, %v28_v8, 0.0 }
   0x7   :  { %v37_v16 = vadd.f32 %v36_v11, %v35_v14  ;;  %vm89_vm2 = vcmask 523264   ;;  %vm168_vm3 = vcmask 1040384   ;;  %vm161_vm4 = vcmask 7168   ;;  %s308_s0 = smov [#allocation4]   ;;  %s210_s28 = sshll.u32 %s375_s1, 4  ;;  %s211_s28 = int_to_ptr.hbm [resolvable:$true] %s210_s28 }
   0x8   :  { %106 = vmatpush.msra.mxu0 %v26_v12  ;;  %244 = vmatpush.msra.mxu2 %v26_v12  ;;  %v29_v29 = vld [vmem:[#allocation2] sm:$0x1]  ;;  %s208_s25 = sshll.u32 %s308_s0, 4  ;;  %s309_s1 = smov [#allocation6]   ;;  %s209_s25 = int_to_ptr.vmem [resolvable:$true] %s208_s25 }
   0x9   :  { %v39_v18 = vadd.f32 %v38_v15, %v37_v16  ;;  %s218_s29 = sshll.u32 %s309_s1, 4  ;;  %s220_s4 = sshll.u32 %s376_s2, 4  ;;  %s219_s29 = int_to_ptr.vmem [resolvable:$true] %s218_s29  ;;  %s221_s4 = int_to_ptr.hbm [resolvable:$true] %s220_s4 }
   0xa   :  { %58 = vxpose.xlu0.b32.cont [2/8] (short) (narrow) %v22_v1, 16  ;;  %107 = vmatpush.msra.mxu0 %v25_v7  ;;  %v55_v38 = vld [vmem:[#allocation3] sm:$0xff]  ;;  %s310_s5 = smov 128   ;;  %s311_s6 = smov 8  }
   0xb   :  { %v41_v20 = vadd.f32 %v40_v17, %v39_v18  ;;  %245 = vmatpush.msra.mxu2 %v25_v7  ;;  %v56_v41 = vld [vmem:[#allocation3 + $0x8] sm:$0xff] }
   0xc   :  { %108 = vmatpush.msra.mxu0 %v24_v5 }
   0xd   :  { %v43_v22 = vadd.f32 %v42_v19, %v41_v20  ;;  %246 = vmatpush.msra.mxu2 %v24_v5 }
   0xe   :  { %109 = vmatpush.msra.mxu0 %v23_v2 }
   0xf   :  { %v45_v23 = vadd.f32 %v44_v21, %v43_v22  ;;  %247 = vmatpush.msra.mxu2 %v23_v2 }
  0x10   :  { %110 = vmatpush.msra.mxu0 %v22_v1 }
  0x11   :  { %v46_v24 = vrot.slane %v45_v23, 4  ;;  %248 = vmatpush.msra.mxu2 %v22_v1 }
  0x12   :  { %59 = vxpose.xlu0.b32.cont [3/8] (short) (narrow) %v23_v2, 16  ;;  %111 = vmatpush.msra.mxu0 %v21_v0 }
  0x13   :  { %v47_v25 = vadd.f32 %v46_v24, %v45_v23  ;;  %249 = vmatpush.msra.mxu2 %v21_v0 }
  0x15   :  { %v48_v26 = vrot.slane %v47_v25, 2 }
  0x17   :  { %v49_v27 = vadd.f32 %v48_v26, %v47_v25 }
  0x19   :  { %v50_v28 = vrot.slane %v49_v27, 1 }
  0x1a   :  { %60 = vxpose.xlu0.b32.cont [4/8] (short) (narrow) %v24_v5, 16 }
  0x1b   :  { %v51_v30 = vadd.f32 %v50_v28, %v49_v27 }
  0x1d   :  { %v52_v31 = vadd.f32 %v51_v30, %v29_v29 }
  0x1f   :  { %54 = vst.msk [vmem:[#allocation2] sm:$0x1] %vm16_vm1, %v52_v31 }
  0x22   :  { %61 = vxpose.xlu0.b32.cont [5/8] (short) (narrow) %v25_v7, 16 }
  0x26   :  { %v126_v32 = vld [vmem:[#allocation2] sm:$0x1] }
  0x27   :  { %v127_v33 = vmul.f32 0.015625, %v126_v32 }
  0x29   :  { %129 = vxpose.xlu1.b32.start.end [1/1] (short) (narrow) %v127_v33, 16  ;;  %128 = vst.msk [vmem:[#allocation4] sm:$0x1] %vm16_vm1, %v127_v33  ;;  %239 = vmatpush.msk.msra.mxu1 %vm168_vm3, %v127_v33 }
  0x2a   :  { %62 = vxpose.xlu0.b32.cont [6/8] (short) (narrow) %v26_v12, 16  ;;  %213 = dma.vmem_to_hbm [thread:$0]  %s209_s25, 16, %s211_s28, [#allocation5]  }
  0x32   :  { %63 = vxpose.xlu0.b32.cont [7/8] (short) (narrow) %v27_v13, 16 }
  0x3a   :  { %64 = vxpose.xlu0.b32.end [8/8] (short) (narrow) %v28_v8, 16 }
  0xa6   :  { %v73_v34 = vpop.trf.xlu0 }
  0xa7   :  { %237 = vmatmul.msk.f32.vlgmr.msra.gmra.mxu0 %vm89_vm2, %v73_v34 }
  0xae   :  { %v74_v35 = vpop.trf.xlu0 }
  0xaf   :  { %238 = vmatmul.msk.f32.vlgmr.msra.gmra.mxu2 %vm89_vm2, %v74_v35 }
  0xcd   :  { %v145_v36 = vpop.trf.xlu1 }
  0xce   :  { %240 = vmatmul.msk.f32.vlgmr.msra.gmra.mxu1 %vm161_vm4, %v145_v36 }
  0xd5   :  { %v146_v37 = vpop.trf.xlu1 }
  0xd6   :  { %241 = vmatmul.msk.f32.gmra.mxu1 %vm161_vm4, %v146_v37 }
 0x124   :  { %v113_v39 = vpop.f32.mrf.mxu0 }
 0x125   :  { %v119_v40 = vadd.f32 %v113_v39, %v55_v38 }
 0x127   :  { %121 = vst.msk [vmem:[#allocation3] sm:$0xff] %vm18_vm0, %v119_v40 }
 0x12e   :  { %v195_v44 = vld [vmem:[#allocation3] sm:$0xff] }
 0x12f   :  { %v197_v45 = vmul.f32 0.015625, %v195_v44 }
 0x132   :  { %v116_v42 = vpop.f32.mrf.mxu2 }
 0x133   :  { %v120_v43 = vadd.f32 %v116_v42, %v56_v41 }
 0x135   :  { %122 = vst.msk [vmem:[#allocation3 + $0x8] sm:$0xff] %vm18_vm0, %v120_v43 }
 0x13c   :  { %v196_v48 = vld [vmem:[#allocation3 + $0x8] sm:$0xff] }
 0x13d   :  { %v198_v49 = vmul.f32 0.015625, %v196_v48 }
 0x14b   :  { %v189_v46 = vpop.f32.mrf.mxu1 }
 0x14c   :  { %v199_v47 = vsub.f32 %v197_v45, %v189_v46 }
 0x14e   :  { %201 = vst.msk [vmem:[#allocation6] sm:$0xff] %vm18_vm0, %v199_v47 }
 0x153   :  { %v192_v50 = vpop.f32.mrf.mxu1 }
 0x154   :  { %v200_v51 = vsub.f32 %v198_v49, %v192_v50 }
 0x156   :  { %202 = vst.msk [vmem:[#allocation6 + $0x8] sm:$0xff] %vm18_vm0, %v200_v51 }
 0x157   :  { %226 = dma.vmem_to_hbm [thread:$0]  %s219_s29, 256, %s221_s4, [#allocation7], %s310_s5, %s310_s5, %s311_s6  }
 0x158   :  { %303 = dma.done.wait [#allocation5], 16  }
 0x159   :  { %304 = vsyncadd [#allocation5], 4294967280 }
 0x15a   :  { %305 = dma.done.wait [#allocation7], 256  }
 0x15b   :  { %306 = vsyncadd [#allocation7], 4294967040 }
 0x15c   :  { %235 = vsyncpa [#allocation5], 1 }
 0x15d   :  { %236 = vsyncpa [#allocation7], 1 }

</bundles_post_ra>
